<compile_context>
chip_gen: v5e
topology: v5e:2x2
jax: 0.10.0
libtpu: 0.0.40
codegen_flags: <defaults>
</compile_context>

<pallas_src>
import functools

import numpy as np
import jax
import jax.numpy as jnp
from jax.experimental import pallas as pl
from jax.experimental.pallas import tpu as pltpu

MAX_CHILDREN = 4  # static padding of the variable child count per tree node


def _round_up(x, m):
    return (x + m - 1) // m * m


# ----------------------------------------------------------------------------
# Kernel 1: fused TreeSummarize traversal (one pallas_call per tree)
# ----------------------------------------------------------------------------

def _tree_encode_kernel(order_ref, child_ref,            # SMEM scalar-prefetch
                        x_ref, wx_ref, bx_ref,           # VMEM-resident inputs
                        wh_ref, bh_ref, wfh_ref, bfh_ref,
                        c_ref, h_ref,                    # outputs, resident across grid
                        ch_buf):                         # VMEM scratch (2*MAX_CHILDREN, mem)
    """One grid step == one tree node (post-order).

    Child-sum Tree-LSTM cell == TreeSummarize.node_forward.  Zero-padded child
    rows (c=0, h=0) contribute exactly 0 to the child_h sum and to sum(f*c),
    matching the PyTorch leaf / non-leaf semantics.
    States are stored at row = post-order position; padded children point at a
    never-written (hence zero) row >= num_nodes.
    """
    i = pl.program_id(0)
    mem = c_ref.shape[1]

    @pl.when(i == 0)
    def _init():
        c_ref[...] = jnp.zeros_like(c_ref)
        h_ref[...] = jnp.zeros_like(h_ref)

    # Gather child states from the resident state buffers into a small scratch:
    # rows [0:MC] = child_c, rows [MC:2MC] = child_h.
    for k in range(MAX_CHILDREN):
        cj = child_ref[i, k]
        ch_buf[pl.ds(k, 1), :] = c_ref[pl.ds(cj, 1), :]
        ch_buf[pl.ds(MAX_CHILDREN + k, 1), :] = h_ref[pl.ds(cj, 1), :]
    ch_c = ch_buf[0:MAX_CHILDREN, :]
    ch_h = ch_buf[MAX_CHILDREN:2 * MAX_CHILDREN, :]
    ch_h_sum = jnp.sum(ch_h, axis=0, keepdims=True)            # (1, mem)

    node = order_ref[i]
    x = x_ref[pl.ds(node, 1), :]                               # (1, in_dim)

    # Folded x-side matmul: wx = [W_ioux | W_fx]  -> one (1,in)@(in,4*mem) MXU op.
    xz = jnp.dot(x, wx_ref[...], preferred_element_type=jnp.float32) + bx_ref[...]
    iou = (xz[:, 0:3 * mem]
           + jnp.dot(ch_h_sum, wh_ref[...], preferred_element_type=jnp.float32)
           + bh_ref[...])                                      # (1, 3*mem)
    i_g = jax.nn.sigmoid(iou[:, 0:mem])
    o_g = jax.nn.sigmoid(iou[:, mem:2 * mem])
    u = jnp.tanh(iou[:, 2 * mem:3 * mem])

    fx = xz[:, 3 * mem:4 * mem]                                # (1, mem)
    fh = jnp.dot(ch_h, wfh_ref[...], preferred_element_type=jnp.float32) + bfh_ref[...]
    f = jax.nn.sigmoid(fh + fx)                                # (MC, mem), broadcast fx
    fc = f * ch_c

    c = i_g * u + jnp.sum(fc, axis=0, keepdims=True)           # (1, mem)
    h = o_g * jnp.tanh(c)

    c_ref[pl.ds(i, 1), :] = c
    h_ref[pl.ds(i, 1), :] = h


# ----------------------------------------------------------------------------
# Kernel 2: fused AttnDecoder step (attn + softmax + bmm + combine + relu
#           + leaf tree-cell + out log-softmax) — a single pallas_call
# ----------------------------------------------------------------------------

def _attn_decoder_kernel(x_ref, henc_ref,
                         w_emb_ref, wa_h_ref, b_attn_ref, wc_a_ref, b_comb_ref,
                         w_ioux_ref, b_iou_ref, w_out_ref, b_out_ref,
                         aw_ref, c_ref, h_ref, out_ref,
                         *, root_id, root_pos, max_length):
    L = max_length
    mem = c_ref.shape[1]

    emb = x_ref[pl.ds(root_id, 1), :]       # embedded = root node feature (dropout=id in eval)
    hid = henc_ref[pl.ds(root_pos, 1), :]   # root h state (last in post-order)
    enc = henc_ref[pl.ds(0, L), :]          # encoder outputs padded with zeros to max_length

    # Folded embedded-side matmul: w_emb = [Wa_emb | Wc_emb]  -> (1, L+mem).
    emb_z = jnp.dot(emb, w_emb_ref[...], preferred_element_type=jnp.float32)

    logits = (emb_z[:, 0:L]
              + jnp.dot(hid, wa_h_ref[...], preferred_element_type=jnp.float32)
              + b_attn_ref[...])                               # (1, L)
    m = jnp.max(logits, axis=1, keepdims=True)
    e = jnp.exp(logits - m)
    aw = e * pl.reciprocal(jnp.sum(e, axis=1, keepdims=True), approx=True)  # softmax

    applied = jnp.dot(aw, enc, preferred_element_type=jnp.float32)          # (1, mem)
    comb = (emb_z[:, L:]
            + jnp.dot(applied, wc_a_ref[...], preferred_element_type=jnp.float32)
            + b_comb_ref[...])
    combined = jnp.maximum(comb, 0.0)                          # F.relu

    # Decoder's TreeSummarize cell applied to `combined` as a leaf node:
    # child states are zero, so iou = ioux(x) + b_ioux + b_iouh and fc == 0 exactly.
    iou = jnp.dot(combined, w_ioux_ref[...], preferred_element_type=jnp.float32) + b_iou_ref[...]
    i_g = jax.nn.sigmoid(iou[:, 0:mem])
    o_g = jax.nn.sigmoid(iou[:, mem:2 * mem])
    u = jnp.tanh(iou[:, 2 * mem:3 * mem])
    c = i_g * u
    h = o_g * jnp.tanh(c)

    # F.log_softmax(self.out(output[0]), dim=1)  with output[0] == c (as in reference).
    lo = jnp.dot(c, w_out_ref[...], preferred_element_type=jnp.float32) + b_out_ref[...]
    mo = jnp.max(lo, axis=1, keepdims=True)
    lse = jnp.log(jnp.sum(jnp.exp(lo - mo), axis=1, keepdims=True)) + mo

    aw_ref[...] = aw
    c_ref[...] = c
    h_ref[...] = h
    out_ref[...] = lo - lse


# ----------------------------------------------------------------------------
# Host-side tree flattening + kernel wrappers
# ----------------------------------------------------------------------------

class TreeNode:
    def __init__(self, node_id, children=()):
        self.id = node_id
        self.children = list(children)
        self.num_children = len(self.children)


def build_tree_tables(tree):
    """Post-order flatten: returns (node ids in post-order, per-node child positions)."""
    order_ids, child_pos = [], []

    def visit(node):
        kids = [visit(ch) for ch in node.children]
        assert len(kids) <= MAX_CHILDREN, "increase MAX_CHILDREN"
        pos = len(order_ids)
        order_ids.append(node.id)
        child_pos.append(kids)
        return pos

    visit(tree)
    return order_ids, child_pos


def tree_encode(order_ids, child_pos, inputs, p, min_rows):
    """TreeSummarize.forward for a whole tree in one pallas_call.

    Returns (c_post, h_post): per-node states at row = post-order position,
    zero-padded to `rows >= max(num_nodes+1, min_rows)` (the padding rows double
    as the attention encoder_outputs padding and as the zero-child slot).
    """
    n = len(order_ids)
    mem = p["w_iouh"].shape[0]
    rows = _round_up(max(n + 1, min_rows), 8)
    zero_slot = n                                            # never written -> stays zero

    child_np = np.full((n, MAX_CHILDREN), zero_slot, np.int32)
    for j, ks in enumerate(child_pos):
        for k, cp in enumerate(ks):
            child_np[j, k] = cp
    order_arr = jnp.asarray(np.asarray(order_ids, np.int32))
    child_arr = jnp.asarray(child_np)

    const = lambda i, o, ch: (0, 0)   # weights / states resident in VMEM for the whole grid
    grid_spec = pltpu.PrefetchScalarGridSpec(
        num_scalar_prefetch=2,
        grid=(n,),
        in_specs=[
            pl.BlockSpec(inputs.shape, const),
            pl.BlockSpec(p["wx"].shape, const),
            pl.BlockSpec(p["bx"].shape, const),
            pl.BlockSpec(p["w_iouh"].shape, const),
            pl.BlockSpec(p["b_iouh"].shape, const),
            pl.BlockSpec(p["w_fh"].shape, const),
            pl.BlockSpec(p["b_fh"].shape, const),
        ],
        out_specs=[
            pl.BlockSpec((rows, mem), const),
            pl.BlockSpec((rows, mem), const),
        ],
        scratch_shapes=[pltpu.VMEM((2 * MAX_CHILDREN, mem), jnp.float32)],
    )
    c_post, h_post = pl.pallas_call(
        _tree_encode_kernel,
        out_shape=(jax.ShapeDtypeStruct((rows, mem), jnp.float32),
                   jax.ShapeDtypeStruct((rows, mem), jnp.float32)),
        grid_spec=grid_spec,
        compiler_params=pltpu.CompilerParams(dimension_semantics=("arbitrary",)),
    )(order_arr, child_arr, inputs,
      p["wx"], p["bx"], p["w_iouh"], p["b_iouh"], p["w_fh"], p["b_fh"])
    return c_post, h_post


def attn_decode(tree, inputs, order_ids, c_post, h_post, p):
    """AttnDecoder.forward (single step), fully fused in one pallas_call.

    TODO(synk): the reference forward feeds a python list/tuple into tensor ops
    (input_data.view, cat with hidden[1], bmm with a state tuple); we use the
    standard seq2seq interpretation: embedded = root-node feature, hidden[1] ->
    root h state, encoder_outputs -> per-node h states (post-order) padded to
    max_length.
    """
    n = len(order_ids)
    L = p["max_length"]
    mem = p["b_comb"].shape[1]
    out_dim = p["b_out"].shape[1]

    kernel = functools.partial(_attn_decoder_kernel,
                               root_id=int(tree.id), root_pos=n - 1, max_length=L)
    aw, c, h, log_probs = pl.pallas_call(
        kernel,
        out_shape=(jax.ShapeDtypeStruct((1, L), jnp.float32),
                   jax.ShapeDtypeStruct((1, mem), jnp.float32),
                   jax.ShapeDtypeStruct((1, mem), jnp.float32),
                   jax.ShapeDtypeStruct((1, out_dim), jnp.float32)),
    )(inputs, h_post,
      p["w_emb"], p["wa_h"], p["b_attn"], p["wc_a"], p["b_comb"],
      p["w_ioux"], p["b_iou"], p["w_out"], p["b_out"])

    record = (list(order_ids),
              [(c_post[j:j + 1], h_post[j:j + 1]) for j in range(n)] + [(c, h)])
    return log_probs, record, aw


def cdfix_forward(data, params):
    """CDFix.forward: two tree encoders -> two attention decoders -> records."""
    (tree1, inputs1), (tree2, inputs2) = data
    order1, child1 = build_tree_tables(tree1)
    order2, child2 = build_tree_tables(tree2)

    c1, h1 = tree_encode(order1, child1, inputs1, params["encoder_1"],
                         params["decoder_1"]["max_length"])
    c2, h2 = tree_encode(order2, child2, inputs2, params["encoder_2"],
                         params["decoder_2"]["max_length"])

    _, record_1, _ = attn_decode(tree1, inputs1, order1, c1, h1, params["decoder_1"])
    _, record_2, _ = attn_decode(tree2, inputs2, order2, c2, h2, params["decoder_2"])
    return record_1, record_2


# ----------------------------------------------------------------------------
# Parameter init (deterministic, PyTorch-Linear-like uniform) + packing
# ----------------------------------------------------------------------------

def init_linear(key, in_dim, out_dim):
    kw, kb = jax.random.split(key)
    scale = 1.0 / jnp.sqrt(jnp.float32(in_dim))
    w = jax.random.uniform(kw, (in_dim, out_dim), jnp.float32, -scale, scale)
    b = jax.random.uniform(kb, (1, out_dim), jnp.float32, -scale, scale)
    return w, b


def _init_tree_raw(key, in_dim, mem_dim):
    ks = jax.random.split(key, 4)
    w_ioux, b_ioux = init_linear(ks[0], in_dim, 3 * mem_dim)
    w_iouh, b_iouh = init_linear(ks[1], mem_dim, 3 * mem_dim)
    w_fx, b_fx = init_linear(ks[2], in_dim, mem_dim)
    w_fh, b_fh = init_linear(ks[3], mem_dim, mem_dim)
    return dict(w_ioux=w_ioux, b_ioux=b_ioux, w_iouh=w_iouh, b_iouh=b_iouh,
                w_fx=w_fx, b_fx=b_fx, w_fh=w_fh, b_fh=b_fh)


def init_tree_summarize(key, in_dim, mem_dim):
    raw = _init_tree_raw(key, in_dim, mem_dim)
    # Fold the two x-side matmuls: one (in_dim, 4*mem) weight, one bias.
    return dict(
        wx=jnp.concatenate([raw["w_ioux"], raw["w_fx"]], axis=1),
        bx=jnp.concatenate([raw["b_ioux"], raw["b_fx"]], axis=1),
        w_iouh=raw["w_iouh"], b_iouh=raw["b_iouh"],
        w_fh=raw["w_fh"], b_fh=raw["b_fh"],
    )


def init_attn_decoder(key, hidden_size, output_size, max_length):
    ks = jax.random.split(key, 4)
    w_attn, b_attn = init_linear(ks[0], 2 * hidden_size, max_length)
    w_comb, b_comb = init_linear(ks[1], 2 * hidden_size, hidden_size)
    w_out, b_out = init_linear(ks[2], hidden_size, output_size)
    tree_raw = _init_tree_raw(ks[3], hidden_size, hidden_size)
    wa_e, wa_h = w_attn[:hidden_size], w_attn[hidden_size:]
    wc_e, wc_a = w_comb[:hidden_size], w_comb[hidden_size:]
    return dict(
        # folded embedded-side matmul: [attn | attn_combine] halves acting on `embedded`
        w_emb=jnp.concatenate([wa_e, wc_e], axis=1),        # (H, L + H)
        wa_h=wa_h, b_attn=b_attn,
        wc_a=wc_a, b_comb=b_comb,
        # decoder tree cell is applied to a leaf -> fc term is exactly 0, so fx/fh
        # are unused; fold b_ioux + b_iouh.
        w_ioux=tree_raw["w_ioux"],
        b_iou=tree_raw["b_ioux"] + tree_raw["b_iouh"],
        w_out=w_out, b_out=b_out,
        max_length=max_length,
    )


def init_cdfix(key, h_size, feat_size, max_node_amount):
    ks = jax.random.split(key, 4)
    return dict(
        encoder_1=init_tree_summarize(ks[0], feat_size, h_size),
        encoder_2=init_tree_summarize(ks[1], feat_size, h_size),
        decoder_1=init_attn_decoder(ks[2], h_size, h_size, max_node_amount[0]),
        decoder_2=init_attn_decoder(ks[3], h_size, h_size, max_node_amount[1]),
    )


# ----------------------------------------------------------------------------
# Demo
# ----------------------------------------------------------------------------

if __name__ == "__main__":
    H_SIZE = 32
    FEAT = 32                 # feature_representation_size (== h_size so decoder dims match)
    MAX_NODE_AMOUNT = (8, 8)

    key = jax.random.PRNGKey(0)
    k_par, k_in1, k_in2 = jax.random.split(key, 3)
    params = init_cdfix(k_par, H_SIZE, FEAT, MAX_NODE_AMOUNT)

    # small deterministic trees
    # tree1: 0 -> (1 -> (3, 4), 2)   tree2: 0 -> (1, 2 -> (3))
    tree1 = TreeNode(0, [TreeNode(1, [TreeNode(3), TreeNode(4)]), TreeNode(2)])
    tree2 = TreeNode(0, [TreeNode(1), TreeNode(2, [TreeNode(3)])])
    inputs1 = jax.random.normal(k_in1, (5, FEAT), jnp.float32)
    inputs2 = jax.random.normal(k_in2, (4, FEAT), jnp.float32)

    record_1, record_2 = cdfix_forward(((tree1, inputs1), (tree2, inputs2)), params)

    # block on every produced array
    leaves = []
    for rec in (record_1, record_2):
        for (c, h) in rec[1]:
            leaves.extend([c, h])
    leaves = jax.block_until_ready(leaves)

    ok = all(bool(jnp.all(jnp.isfinite(a))) for a in leaves)
    assert ok, "non-finite values in kernel output"
    print("KERNEL_OK")
</pallas_src>

<mosaic_0001>
module attributes {stable_mosaic.version = 11 : i64} {
  func.func @_tree_encode_kernel(%arg0: i32, %arg1: memref<5xi32, #tpu.memory_space<smem>>, %arg2: memref<5x4xi32, #tpu.memory_space<smem>>, %arg3: memref<5x32xf32, #tpu.memory_space<vmem>>, %arg4: memref<32x128xf32, #tpu.memory_space<vmem>>, %arg5: memref<1x128xf32, #tpu.memory_space<vmem>>, %arg6: memref<32x96xf32, #tpu.memory_space<vmem>>, %arg7: memref<1x96xf32, #tpu.memory_space<vmem>>, %arg8: memref<32x32xf32, #tpu.memory_space<vmem>>, %arg9: memref<1x32xf32, #tpu.memory_space<vmem>>, %arg10: memref<8x32xf32, #tpu.memory_space<vmem>>, %arg11: memref<8x32xf32, #tpu.memory_space<vmem>>, %arg12: memref<8x32xf32, #tpu.memory_space<vmem>>) attributes {dimension_semantics = [#tpu.dimension_semantics<arbitrary>], iteration_bounds = array<i64: 5>, scalar_prefetch = 2 : i64, scratch_operands = 1 : i64, tpu.core_type = #tpu.core_type<tc>, window_params = [{pipeline_mode = #tpu.pipeline_mode<synchronous>, transform_indices = @transform_0, window_bounds = array<i64: 5, 32>}, {pipeline_mode = #tpu.pipeline_mode<synchronous>, transform_indices = @transform_1, window_bounds = array<i64: 32, 128>}, {pipeline_mode = #tpu.pipeline_mode<synchronous>, transform_indices = @transform_2, window_bounds = array<i64: 1, 128>}, {pipeline_mode = #tpu.pipeline_mode<synchronous>, transform_indices = @transform_3, window_bounds = array<i64: 32, 96>}, {pipeline_mode = #tpu.pipeline_mode<synchronous>, transform_indices = @transform_4, window_bounds = array<i64: 1, 96>}, {pipeline_mode = #tpu.pipeline_mode<synchronous>, transform_indices = @transform_5, window_bounds = array<i64: 32, 32>}, {pipeline_mode = #tpu.pipeline_mode<synchronous>, transform_indices = @transform_6, window_bounds = array<i64: 1, 32>}, {pipeline_mode = #tpu.pipeline_mode<synchronous>, transform_indices = @transform_7, window_bounds = array<i64: 8, 32>}, {pipeline_mode = #tpu.pipeline_mode<synchronous>, transform_indices = @transform_8, window_bounds = array<i64: 8, 32>}]} {
    %c0_i32 = arith.constant 0 : i32
    %0 = arith.cmpi eq, %arg0, %c0_i32 : i32
    %1 = arith.extui %0 : i1 to i32
    %c0_i32_0 = arith.constant 0 : i32
    %2 = arith.cmpi ne, %1, %c0_i32_0 : i32
    scf.if %2 {
      %cst_47 = arith.constant 0.000000e+00 : f32
      %91 = vector.broadcast %cst_47 : f32 to vector<8x32xf32>
      %c0_48 = arith.constant 0 : index
      %c0_49 = arith.constant 0 : index
      %92 = vector.load %arg10[%c0_48, %c0_49] : memref<8x32xf32, #tpu.memory_space<vmem>>, vector<8x32xf32>
      tpu.vector_store %arg10[%c0_48, %c0_49], %91 {strides = array<i32>} : memref<8x32xf32, #tpu.memory_space<vmem>>, vector<8x32xf32>,
      %cst_50 = arith.constant 0.000000e+00 : f32
      %93 = vector.broadcast %cst_50 : f32 to vector<8x32xf32>
      %c0_51 = arith.constant 0 : index
      %c0_52 = arith.constant 0 : index
      %94 = vector.load %arg11[%c0_51, %c0_52] : memref<8x32xf32, #tpu.memory_space<vmem>>, vector<8x32xf32>
      tpu.vector_store %arg11[%c0_51, %c0_52], %93 {strides = array<i32>} : memref<8x32xf32, #tpu.memory_space<vmem>>, vector<8x32xf32>,
    } else {
    }
    %3 = arith.index_cast %arg0 : i32 to index
    %c0 = arith.constant 0 : index
    %4 = memref.load %arg2[%3, %c0] : memref<5x4xi32, #tpu.memory_space<smem>>
    %5 = arith.index_cast %4 : i32 to index
    %c0_1 = arith.constant 0 : index
    %6 = vector.load %arg10[%5, %c0_1] : memref<8x32xf32, #tpu.memory_space<vmem>>, vector<1x32xf32>
    %c0_2 = arith.constant 0 : index
    %c0_3 = arith.constant 0 : index
    %7 = vector.load %arg12[%c0_2, %c0_3] : memref<8x32xf32, #tpu.memory_space<vmem>>, vector<1x32xf32>
    tpu.vector_store %arg12[%c0_2, %c0_3], %6 {strides = array<i32>} : memref<8x32xf32, #tpu.memory_space<vmem>>, vector<1x32xf32>,
    %8 = arith.index_cast %4 : i32 to index
    %c0_4 = arith.constant 0 : index
    %9 = vector.load %arg11[%8, %c0_4] : memref<8x32xf32, #tpu.memory_space<vmem>>, vector<1x32xf32>
    %c4 = arith.constant 4 : index
    %c0_5 = arith.constant 0 : index
    %10 = vector.load %arg12[%c4, %c0_5] : memref<8x32xf32, #tpu.memory_space<vmem>>, vector<1x32xf32>
    tpu.vector_store %arg12[%c4, %c0_5], %9 {strides = array<i32>} : memref<8x32xf32, #tpu.memory_space<vmem>>, vector<1x32xf32>,
    %11 = arith.index_cast %arg0 : i32 to index
    %c1 = arith.constant 1 : index
    %12 = memref.load %arg2[%11, %c1] : memref<5x4xi32, #tpu.memory_space<smem>>
    %13 = arith.index_cast %12 : i32 to index
    %c0_6 = arith.constant 0 : index
    %14 = vector.load %arg10[%13, %c0_6] : memref<8x32xf32, #tpu.memory_space<vmem>>, vector<1x32xf32>
    %c1_7 = arith.constant 1 : index
    %c0_8 = arith.constant 0 : index
    %15 = vector.load %arg12[%c1_7, %c0_8] : memref<8x32xf32, #tpu.memory_space<vmem>>, vector<1x32xf32>
    tpu.vector_store %arg12[%c1_7, %c0_8], %14 {strides = array<i32>} : memref<8x32xf32, #tpu.memory_space<vmem>>, vector<1x32xf32>,
    %16 = arith.index_cast %12 : i32 to index
    %c0_9 = arith.constant 0 : index
    %17 = vector.load %arg11[%16, %c0_9] : memref<8x32xf32, #tpu.memory_space<vmem>>, vector<1x32xf32>
    %c5 = arith.constant 5 : index
    %c0_10 = arith.constant 0 : index
    %18 = vector.load %arg12[%c5, %c0_10] : memref<8x32xf32, #tpu.memory_space<vmem>>, vector<1x32xf32>
    tpu.vector_store %arg12[%c5, %c0_10], %17 {strides = array<i32>} : memref<8x32xf32, #tpu.memory_space<vmem>>, vector<1x32xf32>,
    %19 = arith.index_cast %arg0 : i32 to index
    %c2 = arith.constant 2 : index
    %20 = memref.load %arg2[%19, %c2] : memref<5x4xi32, #tpu.memory_space<smem>>
    %21 = arith.index_cast %20 : i32 to index
    %c0_11 = arith.constant 0 : index
    %22 = vector.load %arg10[%21, %c0_11] : memref<8x32xf32, #tpu.memory_space<vmem>>, vector<1x32xf32>
    %c2_12 = arith.constant 2 : index
    %c0_13 = arith.constant 0 : index
    %23 = vector.load %arg12[%c2_12, %c0_13] : memref<8x32xf32, #tpu.memory_space<vmem>>, vector<1x32xf32>
    tpu.vector_store %arg12[%c2_12, %c0_13], %22 {strides = array<i32>} : memref<8x32xf32, #tpu.memory_space<vmem>>, vector<1x32xf32>,
    %24 = arith.index_cast %20 : i32 to index
    %c0_14 = arith.constant 0 : index
    %25 = vector.load %arg11[%24, %c0_14] : memref<8x32xf32, #tpu.memory_space<vmem>>, vector<1x32xf32>
    %c6 = arith.constant 6 : index
    %c0_15 = arith.constant 0 : index
    %26 = vector.load %arg12[%c6, %c0_15] : memref<8x32xf32, #tpu.memory_space<vmem>>, vector<1x32xf32>
    tpu.vector_store %arg12[%c6, %c0_15], %25 {strides = array<i32>} : memref<8x32xf32, #tpu.memory_space<vmem>>, vector<1x32xf32>,
    %27 = arith.index_cast %arg0 : i32 to index
    %c3 = arith.constant 3 : index
    %28 = memref.load %arg2[%27, %c3] : memref<5x4xi32, #tpu.memory_space<smem>>
    %29 = arith.index_cast %28 : i32 to index
    %c0_16 = arith.constant 0 : index
    %30 = vector.load %arg10[%29, %c0_16] : memref<8x32xf32, #tpu.memory_space<vmem>>, vector<1x32xf32>
    %c3_17 = arith.constant 3 : index
    %c0_18 = arith.constant 0 : index
    %31 = vector.load %arg12[%c3_17, %c0_18] : memref<8x32xf32, #tpu.memory_space<vmem>>, vector<1x32xf32>
    tpu.vector_store %arg12[%c3_17, %c0_18], %30 {strides = array<i32>} : memref<8x32xf32, #tpu.memory_space<vmem>>, vector<1x32xf32>,
    %32 = arith.index_cast %28 : i32 to index
    %c0_19 = arith.constant 0 : index
    %33 = vector.load %arg11[%32, %c0_19] : memref<8x32xf32, #tpu.memory_space<vmem>>, vector<1x32xf32>
    %c7 = arith.constant 7 : index
    %c0_20 = arith.constant 0 : index
    %34 = vector.load %arg12[%c7, %c0_20] : memref<8x32xf32, #tpu.memory_space<vmem>>, vector<1x32xf32>
    tpu.vector_store %arg12[%c7, %c0_20], %33 {strides = array<i32>} : memref<8x32xf32, #tpu.memory_space<vmem>>, vector<1x32xf32>,
    %c0_21 = arith.constant 0 : index
    %c0_22 = arith.constant 0 : index
    %35 = vector.load %arg12[%c0_21, %c0_22] : memref<8x32xf32, #tpu.memory_space<vmem>>, vector<4x32xf32>
    %c4_23 = arith.constant 4 : index
    %c0_24 = arith.constant 0 : index
    %36 = vector.load %arg12[%c4_23, %c0_24] : memref<8x32xf32, #tpu.memory_space<vmem>>, vector<4x32xf32>
    %cst = arith.constant dense<0.000000e+00> : vector<32xf32>
    %37 = vector.multi_reduction <add>, %36, %cst [0] : vector<4x32xf32> to vector<32xf32>
    %38 = vector.shape_cast %37 : vector<32xf32> to vector<1x32xf32>
    %39 = arith.index_cast %arg0 : i32 to index
    %40 = memref.load %arg1[%39] : memref<5xi32, #tpu.memory_space<smem>>
    %41 = arith.index_cast %40 : i32 to index
    %c0_25 = arith.constant 0 : index
    %42 = vector.load %arg3[%41, %c0_25] : memref<5x32xf32, #tpu.memory_space<vmem>>, vector<1x32xf32>
    %c0_26 = arith.constant 0 : index
    %c0_27 = arith.constant 0 : index
    %43 = vector.load %arg4[%c0_26, %c0_27] : memref<32x128xf32, #tpu.memory_space<vmem>>, vector<32x128xf32>
    %cst_28 = arith.constant dense<0.000000e+00> : vector<1x128xf32>
    %44 = tpu.matmul %42, %43, %cst_28 {dimension_numbers = #tpu.dot_dimension_numbers<[1], [0], [0], [1], [0, 0, 1, 1], [], []>} : vector<1x32xf32>, vector<32x128xf32>, vector<1x128xf32> -> vector<1x128xf32>
    %c0_29 = arith.constant 0 : index
    %c0_30 = arith.constant 0 : index
    %45 = vector.load %arg5[%c0_29, %c0_30] : memref<1x128xf32, #tpu.memory_space<vmem>>, vector<1x128xf32>
    %46 = arith.addf %44, %45 : vector<1x128xf32>
    %47 = vector.extract_strided_slice %46 {offsets = [0, 0], sizes = [1, 96], strides = [1, 1]} : vector<1x128xf32> to vector<1x96xf32>
    %c0_31 = arith.constant 0 : index
    %c0_32 = arith.constant 0 : index
    %48 = vector.load %arg6[%c0_31, %c0_32] : memref<32x96xf32, #tpu.memory_space<vmem>>, vector<32x96xf32>
    %cst_33 = arith.constant dense<0.000000e+00> : vector<1x96xf32>
    %49 = tpu.matmul %38, %48, %cst_33 {dimension_numbers = #tpu.dot_dimension_numbers<[1], [0], [0], [1], [0, 0, 1, 1], [], []>} : vector<1x32xf32>, vector<32x96xf32>, vector<1x96xf32> -> vector<1x96xf32>
    %50 = arith.addf %47, %49 : vector<1x96xf32>
    %c0_34 = arith.constant 0 : index
    %c0_35 = arith.constant 0 : index
    %51 = vector.load %arg7[%c0_34, %c0_35] : memref<1x96xf32, #tpu.memory_space<vmem>>, vector<1x96xf32>
    %52 = arith.addf %50, %51 : vector<1x96xf32>
    %53 = vector.extract_strided_slice %52 {offsets = [0, 0], sizes = [1, 32], strides = [1, 1]} : vector<1x96xf32> to vector<1x32xf32>
    %54 = arith.negf %53 : vector<1x32xf32>
    %55 = math.exp %54 : vector<1x32xf32>
    %cst_36 = arith.constant 1.000000e+00 : f32
    %56 = vector.broadcast %cst_36 : f32 to vector<1x32xf32>
    %57 = arith.addf %56, %55 : vector<1x32xf32>
    %58 = arith.divf %56, %57 : vector<1x32xf32>
    %59 = vector.extract_strided_slice %52 {offsets = [0, 32], sizes = [1, 32], strides = [1, 1]} : vector<1x96xf32> to vector<1x32xf32>
    %60 = arith.negf %59 : vector<1x32xf32>
    %61 = math.exp %60 : vector<1x32xf32>
    %cst_37 = arith.constant 1.000000e+00 : f32
    %62 = vector.broadcast %cst_37 : f32 to vector<1x32xf32>
    %63 = arith.addf %62, %61 : vector<1x32xf32>
    %64 = arith.divf %62, %63 : vector<1x32xf32>
    %65 = vector.extract_strided_slice %52 {offsets = [0, 64], sizes = [1, 32], strides = [1, 1]} : vector<1x96xf32> to vector<1x32xf32>
    %66 = math.tanh %65 : vector<1x32xf32>
    %67 = vector.extract_strided_slice %46 {offsets = [0, 96], sizes = [1, 32], strides = [1, 1]} : vector<1x128xf32> to vector<1x32xf32>
    %c0_38 = arith.constant 0 : index
    %c0_39 = arith.constant 0 : index
    %68 = vector.load %arg8[%c0_38, %c0_39] : memref<32x32xf32, #tpu.memory_space<vmem>>, vector<32x32xf32>
    %cst_40 = arith.constant dense<0.000000e+00> : vector<4x32xf32>
    %69 = tpu.matmul %36, %68, %cst_40 {dimension_numbers = #tpu.dot_dimension_numbers<[1], [0], [0], [1], [0, 0, 1, 1], [], []>} : vector<4x32xf32>, vector<32x32xf32>, vector<4x32xf32> -> vector<4x32xf32>
    %c0_41 = arith.constant 0 : index
    %c0_42 = arith.constant 0 : index
    %70 = vector.load %arg9[%c0_41, %c0_42] : memref<1x32xf32, #tpu.memory_space<vmem>>, vector<1x32xf32>
    %71 = vector.broadcast %70 : vector<1x32xf32> to vector<4x32xf32>
    %72 = arith.addf %69, %71 : vector<4x32xf32>
    %73 = vector.broadcast %67 : vector<1x32xf32> to vector<4x32xf32>
    %74 = arith.addf %72, %73 : vector<4x32xf32>
    %75 = arith.negf %74 : vector<4x32xf32>
    %76 = math.exp %75 : vector<4x32xf32>
    %cst_43 = arith.constant 1.000000e+00 : f32
    %77 = vector.broadcast %cst_43 : f32 to vector<4x32xf32>
    %78 = arith.addf %77, %76 : vector<4x32xf32>
    %79 = arith.divf %77, %78 : vector<4x32xf32>
    %80 = arith.mulf %79, %35 : vector<4x32xf32>
    %81 = arith.mulf %58, %66 : vector<1x32xf32>
    %cst_44 = arith.constant dense<0.000000e+00> : vector<32xf32>
    %82 = vector.multi_reduction <add>, %80, %cst_44 [0] : vector<4x32xf32> to vector<32xf32>
    %83 = vector.shape_cast %82 : vector<32xf32> to vector<1x32xf32>
    %84 = arith.addf %81, %83 : vector<1x32xf32>
    %85 = math.tanh %84 : vector<1x32xf32>
    %86 = arith.mulf %64, %85 : vector<1x32xf32>
    %87 = arith.index_cast %arg0 : i32 to index
    %c0_45 = arith.constant 0 : index
    %88 = vector.load %arg10[%87, %c0_45] : memref<8x32xf32, #tpu.memory_space<vmem>>, vector<1x32xf32>
    tpu.vector_store %arg10[%87, %c0_45], %84 {strides = array<i32>} : memref<8x32xf32, #tpu.memory_space<vmem>>, vector<1x32xf32>,
    %89 = arith.index_cast %arg0 : i32 to index
    %c0_46 = arith.constant 0 : index
    %90 = vector.load %arg11[%89, %c0_46] : memref<8x32xf32, #tpu.memory_space<vmem>>, vector<1x32xf32>
    tpu.vector_store %arg11[%89, %c0_46], %86 {strides = array<i32>} : memref<8x32xf32, #tpu.memory_space<vmem>>, vector<1x32xf32>,
    return
  }
  func.func @transform_0(%arg0: i32, %arg1: memref<5xi32, #tpu.memory_space<smem>>, %arg2: memref<5x4xi32, #tpu.memory_space<smem>>) -> (i32, i32) {
    %c0_i32 = arith.constant 0 : i32
    %c0_i32_0 = arith.constant 0 : i32
    %c0_i32_1 = arith.constant 0 : i32
    return %c0_i32, %c0_i32_0 : i32, i32
  }
  func.func @transform_1(%arg0: i32, %arg1: memref<5xi32, #tpu.memory_space<smem>>, %arg2: memref<5x4xi32, #tpu.memory_space<smem>>) -> (i32, i32) {
    %c0_i32 = arith.constant 0 : i32
    %c0_i32_0 = arith.constant 0 : i32
    %c0_i32_1 = arith.constant 0 : i32
    return %c0_i32, %c0_i32_0 : i32, i32
  }
  func.func @transform_2(%arg0: i32, %arg1: memref<5xi32, #tpu.memory_space<smem>>, %arg2: memref<5x4xi32, #tpu.memory_space<smem>>) -> (i32, i32) {
    %c0_i32 = arith.constant 0 : i32
    %c0_i32_0 = arith.constant 0 : i32
    %c0_i32_1 = arith.constant 0 : i32
    return %c0_i32, %c0_i32_0 : i32, i32
  }
  func.func @transform_3(%arg0: i32, %arg1: memref<5xi32, #tpu.memory_space<smem>>, %arg2: memref<5x4xi32, #tpu.memory_space<smem>>) -> (i32, i32) {
    %c0_i32 = arith.constant 0 : i32
    %c0_i32_0 = arith.constant 0 : i32
    %c0_i32_1 = arith.constant 0 : i32
    return %c0_i32, %c0_i32_0 : i32, i32
  }
  func.func @transform_4(%arg0: i32, %arg1: memref<5xi32, #tpu.memory_space<smem>>, %arg2: memref<5x4xi32, #tpu.memory_space<smem>>) -> (i32, i32) {
    %c0_i32 = arith.constant 0 : i32
    %c0_i32_0 = arith.constant 0 : i32
    %c0_i32_1 = arith.constant 0 : i32
    return %c0_i32, %c0_i32_0 : i32, i32
  }
  func.func @transform_5(%arg0: i32, %arg1: memref<5xi32, #tpu.memory_space<smem>>, %arg2: memref<5x4xi32, #tpu.memory_space<smem>>) -> (i32, i32) {
    %c0_i32 = arith.constant 0 : i32
    %c0_i32_0 = arith.constant 0 : i32
    %c0_i32_1 = arith.constant 0 : i32
    return %c0_i32, %c0_i32_0 : i32, i32
  }
  func.func @transform_6(%arg0: i32, %arg1: memref<5xi32, #tpu.memory_space<smem>>, %arg2: memref<5x4xi32, #tpu.memory_space<smem>>) -> (i32, i32) {
    %c0_i32 = arith.constant 0 : i32
    %c0_i32_0 = arith.constant 0 : i32
    %c0_i32_1 = arith.constant 0 : i32
    return %c0_i32, %c0_i32_0 : i32, i32
  }
  func.func @transform_7(%arg0: i32, %arg1: memref<5xi32, #tpu.memory_space<smem>>, %arg2: memref<5x4xi32, #tpu.memory_space<smem>>) -> (i32, i32) {
    %c0_i32 = arith.constant 0 : i32
    %c0_i32_0 = arith.constant 0 : i32
    %c0_i32_1 = arith.constant 0 : i32
    return %c0_i32, %c0_i32_0 : i32, i32
  }
  func.func @transform_8(%arg0: i32, %arg1: memref<5xi32, #tpu.memory_space<smem>>, %arg2: memref<5x4xi32, #tpu.memory_space<smem>>) -> (i32, i32) {
    %c0_i32 = arith.constant 0 : i32
    %c0_i32_0 = arith.constant 0 : i32
    %c0_i32_1 = arith.constant 0 : i32
    return %c0_i32, %c0_i32_0 : i32, i32
  }
}

</mosaic_0001>

<bundles_post_ra>
// kernel: tpu_custom_call.1
= control target key start
LH: loop header
LB: loop body
LE: loop exit
PB: predicated region body
PF: predicated region fallthrough
CT: control target
= control target key end

     0   :  { %s954_s19 = smov [#allocation4]   ;;  %s955_s20 = smov [#allocation5]   ;;  %s1143_s0 = inlined_call_operand.vmem [shape: s32[5], index: 0, kind: input, shape index: {}]   ;;  %s1144_s2 = inlined_call_operand.vmem [shape: f32[5,32], index: 2, kind: input, shape index: {}]   ;;  %s1145_s3 = inlined_call_operand.hbm [shape: f32[32,128], index: 3, kind: input, shape index: {}]   ;;  %s1146_s4 = inlined_call_operand.vmem [shape: f32[1,128], index: 4, kind: input, shape index: {}]   ;;  %s1147_s5 = inlined_call_operand.hbm [shape: f32[32,96], index: 5, kind: input, shape index: {}]   ;;  %s1148_s6 = inlined_call_operand.vmem [shape: f32[1,96], index: 6, kind: input, shape index: {}]   ;;  %s1149_s7 = inlined_call_operand.hbm [shape: f32[32,32], index: 7, kind: input, shape index: {}]   ;;  %s1150_s8 = inlined_call_operand.vmem [shape: f32[1,32], index: 8, kind: input, shape index: {}]   ;;  %s1151_s9 = inlined_call_operand.hbm [shape: f32[8,32], index: 9, kind: output, shape index: {0}]   ;;  %s1152_s10 = inlined_call_operand.hbm [shape: f32[8,32], index: 10, kind: output, shape index: {1}]   ;;  %s1153_s1 = inlined_call_operand.vmem [shape: s32[5,4], index: 1, kind: input, shape index: {}]  }
   0x1   :  { %s17_s15 = sshll.u32 %s1143_s0, 4  ;;  %s22_s18 = sshll.u32 %s1153_s1, 4  ;;  %s18_s15 = int_to_ptr.vmem [resolvable:$true] %s17_s15  ;;  %s23_s18 = int_to_ptr.vmem [resolvable:$true] %s22_s18 }
   0x2   :  { %20 = dma.vmem_to_smem %s18_s15, 16, %s954_s19, [#allocation3] }
   0x3   :  { %25 = dma.vmem_to_smem %s23_s18, 128, %s955_s20, [#allocation3] }
   0x4   :  { %932 = dma.done.wait [#allocation3], 144 }
   0x5   :  { %933 = vsyncadd [#allocation3], 4294967152 }
   0x6   :  { %28 = sfence }
   0x7   :  { %29 = vsyncpa [#allocation7], 0 }
   0x8   :  { %30 = vsyncpa [#allocation10], 0 }
   0x9   :  { %31 = vsyncpa [#allocation8], 0 }
   0xa   :  { %32 = vsyncpa [#allocation14], 0  ;;  %s1028_s21 = smov 0  }
   0xb LB: > { %s1034_s0 = sadd.s32 4294967295, %s952_s21   ;;  %p655_p0 = scmp.ge.s32.totalorder %s952_s21, 1  ;;  %s952_s21 = sphi %s1028_s21, %s38_s21  }
   0xc   : > { %p232_p1 = scmp.lt.s32.totalorder %s952_s21, 6  ;;  %p656_p2 = scmp.ne.s32.totalorder %s1034_s0, 0 }
   0xd   : > { %p714_p3 = scmp.eq.s32.totalorder %s1034_s0, 0  ;;  %s263_s23 = sshll.u32 %s1147_s5, 4  ;;  %s264_s23 = int_to_ptr.hbm [resolvable:$true] %s263_s23 }
   0xe   : > { %p1043_p4 = pnand %p655_p0, %p232_p1  ;;  %s246_s27 = sshll.u32 %s1145_s3, 4  ;;  %s247_s27 = int_to_ptr.hbm [resolvable:$true] %s246_s27 }
   0xf   : > { %s956_s28 = smov [#allocation9]   ;;  %s957_s30 = smov [#allocation6]  }
  0x10   : > { %p704_p5 = pneg %p1043_p4  ;;  %s265_s29 = sshll.u32 %s956_s28, 4  ;;  %s266_s29 = int_to_ptr.vmem [resolvable:$true] %s265_s29 }
  0x11   : > { %s248_s11 = sshll.u32 %s957_s30, 4  ;;  %s280_s14 = sshll.u32 %s1149_s7, 4  ;;  %s249_s11 = int_to_ptr.vmem [resolvable:$true] %s248_s11  ;;  %s281_s14 = int_to_ptr.hbm [resolvable:$true] %s280_s14 }
  0x12   : > { %p705_p6 = pnand %p714_p3, %p704_p5  ;;  %s958_s15 = smov 128  }
  0x13   : > { %s959_s16 = smov 8   ;;  %s960_s17 = smov [#allocation11]  }
  0x14   : > { %710 = dma.hbm_to_vmem [thread:$0]  (!%p705_p6), %s264_s23, 512, %s266_s29, [#allocation10], %s958_s15, %s958_s15, %s959_s16  }
  0x15   : > { %707 = dma.hbm_to_vmem [thread:$0]  (!%p705_p6), %s247_s27, 512, %s249_s11, [#allocation7], %s958_s15, %s958_s15, %s959_s16  }
  0x16   : > { %s282_s18 = sshll.u32 %s960_s17, 4  ;;  %301 = sbr.rel (%p1043_p4) target bundleno = 583 (0x247), region = 48  ;;  %s283_s18 = int_to_ptr.vmem [resolvable:$true] %s282_s18 }
  0x17   : > { %713 = dma.hbm_to_vmem [thread:$0]  (!%p705_p6), %s281_s14, 512, %s283_s18, [#allocation10], %s958_s15, %s958_s15, %s959_s16  }
  0x1b   : > { %935 = dma.done.wait (%p714_p3), [#allocation7], 512  }
  0x1c   : > { %937 = vsyncadd (%p714_p3), [#allocation7], 4294966784 }
  0x1d   : > { %939 = dma.done.wait (%p714_p3), [#allocation10], 1024  }
  0x1e   : > { %941 = vsyncadd (%p714_p3), [#allocation10], 4294966272  ;;  %339 = sbr.rel (%p656_p2) target bundleno = 38 (0x26), region = 64 }
  0x23   : > { %vm340_vm0 = vcmask 261120   ;;  %v961_v0 = vmov 0.0  }
  0x24   : > { %341 = vst.msk [vmem:[#allocation12] sm:$0xff] %vm340_vm0, %v961_v0 }
  0x25   : > { %342 = vst.msk [vmem:[#allocation13] sm:$0xff] %vm340_vm0, %v961_v0 }
  0x26 PF: > { %v392_v1 = vld [vmem:[#allocation6 + $0x18] sm:$0xff]  ;;  %v391_v2 = vld [vmem:[#allocation6 + $0x10] sm:$0xff]  ;;  %s1070_s19 = sld [smem:[#allocation4 + %s1034_s0]]  ;;  %s664_s20 = sshll.u32 %s1034_s0, 7  ;;  %v390_v5 = vld [vmem:[#allocation6 + $0x8] sm:$0xff]  ;;  %vm394_vm1 = vcmask 261120  }
  0x27   : > { %410 = vmatpush.msra.mxu0 %v392_v1  ;;  %v421_v3 = vld [vmem:[#allocation9 + $0x18] sm:$0xff]  ;;  %v420_v4 = vld [vmem:[#allocation9 + $0x10] sm:$0xff]  ;;  %s1073_s1 = sld [smem:[#allocation5 + %s664_s20]]  ;;  %s352_s22 = sadd.s32 1, %s664_s20  ;;  %v419_v7 = vld [vmem:[#allocation9 + $0x8] sm:$0xff]  ;;  %vm347_vm2 = vcmask 253952  }
  0x28   : > { %437 = vmatpush.msra.mxu1 %v421_v3  ;;  %s1075_s23 = sld [smem:[#allocation5 + %s352_s22]]  ;;  %s360_s24 = sadd.s32 2, %s664_s20  ;;  %v471_v6 = vld [vmem:[#allocation11 + $0x18] sm:$0xff]  ;;  %v470_v8 = vld [vmem:[#allocation11 + $0x10] sm:$0xff]  ;;  %v389_v9 = vld [vmem:[#allocation6] sm:$0xff]  ;;  %vm378_vm3 = vcmask 257024  }
  0x29   : > { %411 = vmatpush.msra.mxu0 %v391_v2  ;;  %s1077_s25 = sld [smem:[#allocation5 + %s360_s24]]  ;;  %s368_s26 = sadd.s32 3, %s664_s20  ;;  %491 = vmatpush.msra.mxu2 %v471_v6  ;;  %v469_v10 = vld [vmem:[#allocation11 + $0x8] sm:$0xff]  ;;  %v418_v11 = vld [vmem:[#allocation9] sm:$0xff]  ;;  %v393_v26 = vld [vmem:[%s1146_s4] sm:$0x1] }
  0x2a   : > { %438 = vmatpush.msra.mxu1 %v420_v4  ;;  %s1079_s27 = sld [smem:[#allocation5 + %s368_s26]]  ;;  %v468_v12 = vld [vmem:[#allocation11] sm:$0xff]  ;;  %s962_s17 = smov 32   ;;  %v446_v31 = vld [vmem:[%s1148_s6] sm:$0x1] }
  0x2b   : > { %412 = vmatpush.msra.mxu0 %v390_v5  ;;  %492 = vmatpush.msra.mxu2 %v470_v8  ;;  %s963_s20 = smov 64   ;;  %v745_v38 = vld [vmem:[%s1150_s8] ss:$0 sm:$0xff]  ;;  %p720_p7 = scmp.eq.s32.totalorder %s1034_s0, 4 }
  0x2c   : > { %s387_s30 = scalar_lea.vmem %s1144_s2, %s1070_s19  ;;  %439 = vmatpush.msra.mxu1 %v419_v7  ;;  %s572_s18 = sshll.u32 %s1152_s10, 4  ;;  %s573_s18 = int_to_ptr.hbm [resolvable:$true] %s572_s18 }
  0x2d   : > { %413 = vmatpush.msra.mxu0 %v389_v9  ;;  %v388_v13 = vld [vmem:[%s387_s30] sm:$0x1]  ;;  %493 = vmatpush.msra.mxu2 %v469_v10  ;;  %s349_s11 = scalar_lea.vmem [#allocation13], %s1073_s1  ;;  %s345_s30 = scalar_lea.vmem [#allocation12], %s1073_s1 }
  0x2e   : > { %665 = vmatmul.msk.f32.vlgmr.msra.gmra.mxu0 %vm394_vm1, %v388_v13  ;;  %440 = vmatpush.msra.mxu1 %v418_v11  ;;  %v350_v14 = vld [vmem:[%s349_s11] sm:$0x1]  ;;  %s357_s12 = scalar_lea.vmem [#allocation13], %s1075_s23  ;;  %s354_s22 = scalar_lea.vmem [#allocation12], %s1075_s23 }
  0x2f   : > { %351 = vst.msk [vmem:[#allocation2 + $0x4] sm:$0x1] %vm347_vm2, %v350_v14  ;;  %v358_v15 = vld [vmem:[%s357_s12] sm:$0x1]  ;;  %494 = vmatpush.msra.mxu2 %v468_v12  ;;  %s365_s13 = scalar_lea.vmem [#allocation13], %s1077_s25  ;;  %s362_s24 = scalar_lea.vmem [#allocation12], %s1077_s25 }
  0x30   : > { %359 = vst.msk [vmem:[#allocation2 + $0x5] sm:$0x1] %vm347_vm2, %v358_v15  ;;  %v366_v16 = vld [vmem:[%s365_s13] sm:$0x1]  ;;  %s373_s14 = scalar_lea.vmem [#allocation13], %s1079_s27  ;;  %s370_s26 = scalar_lea.vmem [#allocation12], %s1079_s27 }
  0x31   : > { %367 = vst.msk [vmem:[#allocation2 + $0x6] sm:$0x1] %vm347_vm2, %v366_v16  ;;  %v374_v17 = vld [vmem:[%s373_s14] sm:$0x1]  ;;  %s678_s1 = scalar_lea.vmem [#allocation12], %s952_s21  ;;  %s964_s23 = smov [#allocation12]  }
  0x32   : > { %375 = vst.msk [vmem:[#allocation2 + $0x7] sm:$0x1] %vm347_vm2, %v374_v17  ;;  %v355_v35 = vld [vmem:[%s354_s22] sm:$0x1]  ;;  %s558_s25 = sshll.u32 %s964_s23, 4  ;;  %s560_s12 = sshll.u32 %s1151_s9, 4  ;;  %s559_s25 = int_to_ptr.vmem [resolvable:$true] %s558_s25  ;;  %s561_s12 = int_to_ptr.hbm [resolvable:$true] %s560_s12 }
  0x33   : > { %v363_v36 = vld [vmem:[%s362_s24] sm:$0x1]  ;;  %356 = vst.msk [vmem:[#allocation2 + $0x1] sm:$0x1] %vm347_vm2, %v355_v35  ;;  %s965_s13 = smov 96   ;;  %s966_s14 = smov [#allocation13]  }
  0x34   : > { %v371_v37 = vld [vmem:[%s370_s26] sm:$0x1]  ;;  %364 = vst.msk [vmem:[#allocation2 + $0x2] sm:$0x1] %vm347_vm2, %v363_v36  ;;  %s570_s15 = sshll.u32 %s966_s14, 4  ;;  %s681_s19 = scalar_lea.vmem [#allocation13], %s952_s21  ;;  %s571_s15 = int_to_ptr.vmem [resolvable:$true] %s570_s15 }
  0x35   : > { %v346_v39 = vld [vmem:[%s345_s30] sm:$0x1]  ;;  %372 = vst.msk [vmem:[#allocation2 + $0x3] sm:$0x1] %vm347_vm2, %v371_v37 }
  0x36   : > { %348 = vst.msk [vmem:[#allocation2] sm:$0x1] %vm347_vm2, %v346_v39 }
  0x39   : > { %v377_v18 = vld [vmem:[#allocation2 + $0x4] sm:$0xf] }
  0x3a   : > { %v379_v19 = vsel %vm378_vm3, %v377_v18, 0.0  ;;  %668 = vmatmul.msk.f32.vlgmr.msra.gmra.mxu2 %vm394_vm1, %v377_v18 }
  0x3b   : > { %v380_v20 = vrot.slane %v379_v19, 4 }
  0x3d   : > { %v381_v21 = vadd.f32 %v380_v20, %v379_v19  ;;  %v376_v60 = vld [vmem:[#allocation2] sm:$0xf] }
  0x3f   : > { %v382_v22 = vrot.slane %v381_v21, 2 }
  0x41   : > { %v383_v23 = vadd.f32 %v382_v22, %v381_v21 }
  0x43   : > { %v384_v24 = vrot.slane %v383_v23, 1 }
  0x45   : > { %v385_v25 = vadd.f32 %v384_v24, %v383_v23 }
  0x47   : > { %666 = vmatmul.msk.f32.vlgmr.msra.gmra.mxu1 %vm394_vm1, %v385_v25 }
  0xab   : > { %v415_v27 = vpop.f32.mrf.mxu0 }
  0xac   : > { %v416_v28 = vadd.f32 %v415_v27, %v393_v26 }
  0xae   : > { %v499_v29 = vperm.slane %v416_v28, 0 }
  0xb0   : > { %501 = vrot.lane.b32.xlu0 %v499_v29, %s962_s17 }
  0xbd   : > { %v496_v40 = vpop.f32.mrf.mxu2 }
  0xbe   : > { %v497_v41 = vadd.f32 %v745_v38, %v496_v40 }
  0xc4   : > { %v442_v30 = vpop.f32.mrf.mxu1 }
  0xc5   : > { %v445_v32 = vadd.f32 %v442_v30, %v416_v28 }
  0xc7   : > { %v447_v33 = vadd.f32 %v446_v31, %v445_v32 }
  0xc9   : > { %746 = vtanh.f32 %v447_v33  ;;  %v667_v42 = vmul.f32 -1.442695, %v447_v33 }
  0xcb   : > { %748 = vpow2.f32 %v667_v42 }
  0xcf   : > { %v747_v34 = vpop.eup %746 }
  0xd0   : > { %526 = vrot.lane.b32.xlu0 %v747_v34, %s963_s20 }
  0xd1   : > { %v749_v46 = vpop.eup %748 }
  0xd2   : > { %v451_v48 = vadd.f32 1.0, %v749_v46 }
  0xd4   : > { %v463_v6 = vand.u32 2147483648, %v451_v48  ;;  %vm457_vm9 = vweird.f32 %v451_v48  ;;  %v461_v7 = vand.u32 2147483647, %v451_v48 }
  0xd6   : > { %v464_v12 = vor.u32 1.1754944e-38, %v463_v6  ;;  %vm462_vm11 = vcmp.eq.f32.partialorder %v461_v7, 8.507059e+37 }
 0x122   : > { %v502_v43 = vpop.permute.xlu0 %501 }
 0x123   : > { %v504_v44 = vadd.f32 %v502_v43, %v497_v41 }
 0x125   : > { %v669_v45 = vmul.f32 -1.442695, %v504_v44 }
 0x127   : > { %750 = vpow2.f32 %v669_v45 }
 0x12d   : > { %v751_v47 = vpop.eup %750 }
 0x12e   : > { %v508_v49 = vadd.f32 1.0, %v751_v47 }
 0x130   : > { %752 = vrcp.f32 %v508_v49  ;;  %v520_v54 = vand.u32 2147483648, %v508_v49  ;;  %v518_v57 = vand.u32 2147483647, %v508_v49  ;;  %vm514_vm5 = vweird.f32 %v508_v49 }
 0x131   : > { %754 = vrcp.f32 %v451_v48 }
 0x132   : > { %v521_v59 = vor.u32 1.1754944e-38, %v520_v54  ;;  %vm519_vm7 = vcmp.eq.f32.partialorder %v518_v57, 8.507059e+37 }
 0x136   : > { %v753_v50 = vpop.eup %752 }
 0x137   : > { %v755_v51 = vpop.eup %754  ;;  %v510_v52 = vmul.f32 %v753_v50, %v508_v49  ;;  %vm515_vm4 = vweird.f32 %v753_v50 }
 0x138   : > { %v453_v55 = vmul.f32 %v755_v51, %v451_v48  ;;  %vm516_vm6 = vmor %vm514_vm5, %vm515_vm4  ;;  %vm458_vm8 = vweird.f32 %v755_v51 }
 0x139   : > { %v511_v53 = vsub.f32 1.0, %v510_v52  ;;  %vm459_vm10 = vmor %vm457_vm9, %vm458_vm8 }
 0x13a   : > { %v454_v61 = vsub.f32 1.0, %v453_v55 }
 0x13b   : > { %v512_v56 = vmul.f32 %v753_v50, %v511_v53 }
 0x13c   : > { %v455_v1 = vmul.f32 %v755_v51, %v454_v61 }
 0x13d   : > { %v513_v58 = vadd.f32 %v753_v50, %v512_v56 }
 0x13e   : > { %v456_v4 = vadd.f32 %v755_v51, %v455_v1 }
 0x13f   : > { %v517_v62 = vsel %vm516_vm6, %v753_v50, %v513_v58 }
 0x140   : > { %v522_v63 = vsel %vm519_vm7, %v521_v59, %v517_v62  ;;  %v460_v9 = vsel %vm459_vm10, %v755_v51, %v456_v4 }
 0x141   : > { %v524_v0 = vmul.f32 %v522_v63, %v376_v60  ;;  %v465_v14 = vsel %vm462_vm11, %v464_v12, %v460_v9 }
 0x142   : > { %v527_v11 = vpop.permute.xlu0 %526 }
 0x143   : > { %v530_v2 = vsel %vm378_vm3, %v524_v0, 0.0  ;;  %v529_v15 = vmul.f32 %v527_v11, %v465_v14 }
 0x144   : > { %v531_v3 = vrot.slane %v530_v2, 4 }
 0x146   : > { %v532_v5 = vadd.f32 %v531_v3, %v530_v2 }
 0x148   : > { %v533_v8 = vrot.slane %v532_v5, 2 }
 0x14a   : > { %v534_v10 = vadd.f32 %v533_v8, %v532_v5 }
 0x14c   : > { %v535_v13 = vrot.slane %v534_v10, 1 }
 0x14e   : > { %v536_v16 = vadd.f32 %v535_v13, %v534_v10 }
 0x150   : > { %v537_v17 = vadd.f32 %v536_v16, %v529_v15 }
 0x152   : > { %756 = vtanh.f32 %v537_v17  ;;  %680 = vst.msk [vmem:[%s678_s1 - $0x1] sm:$0x1] %vm347_vm2, %v537_v17 }
 0x153   : > { %697 = dma.vmem_to_hbm [thread:$0]  (%p720_p7), %s559_s25, 128, %s561_s12, [#allocation8]  }
 0x158   : > { %v757_v18 = vpop.eup %756 }
 0x159   : > { %540 = vrot.lane.b32.xlu1 %v757_v18, %s962_s17 }
 0x1cb   : > { %v541_v19 = vpop.permute.xlu1 %540 }
 0x1cc   : > { %v543_v20 = vmul.f32 %v541_v19, %v465_v14 }
 0x1ce   : > { %547 = vrot.lane.b32.xlu1 %v543_v20, %s965_s13 }
 0x240   : > { %v548_v21 = vpop.permute.xlu1 %547 }
 0x241   : > { %683 = vst.msk [vmem:[%s681_s19 - $0x1] sm:$0x1] %vm347_vm2, %v548_v21 }
 0x242   : > { %699 = dma.vmem_to_hbm [thread:$0]  (%p720_p7), %s571_s15, 128, %s573_s18, [#allocation14]  }
 0x243   : > { %943 = dma.done.wait (%p720_p7), [#allocation8], 128  }
 0x244   : > { %945 = vsyncadd (%p720_p7), [#allocation8], 4294967168 }
 0x245   : > { %947 = dma.done.wait (%p720_p7), [#allocation14], 128  }
 0x246   : > { %949 = vsyncadd (%p720_p7), [#allocation14], 4294967168 }
 0x247 PF: > { %s38_s21 = sadd.s32 1, %s952_s21  }
 0x248   : > { %p35_p8 = scmp.ge.s32.totalorder %s38_s21, 7  }
 0x24a   :  { %37 = sbr.rel (!%p35_p8) target bundleno = 11 (0xb), region = 108 }
 0x24f   :  { %591 = vsyncpa [#allocation7], 1 }
 0x250   :  { %593 = vsyncpa [#allocation7 + $0x1], 1 }
 0x251   :  { %594 = vsyncpa [#allocation10], 1 }
 0x252   :  { %595 = vsyncpa [#allocation8], 1 }
 0x253   :  { %597 = vsyncpa [#allocation8 + $0x1], 1 }
 0x254   :  { %598 = vsyncpa [#allocation14], 1 }

</bundles_post_ra>
